<compile_context>
chip_gen: v7x
topology: tpu7x:2x2x1
jax: 0.10.0
libtpu: 0.0.40
codegen_flags: <defaults>
</compile_context>

<pallas_src>
import jax
import jax.numpy as jnp
from jax.experimental import pallas as pl
from jax.experimental.pallas import tpu as pltpu

_LANE = 128
_HIDDEN = 256


def _round_up(x, m):
    return ((x + m - 1) // m) * m


def _mlp_kernel(x_ref, w1_ref, b1_ref, w2_ref, b2_ref, o_ref):
    # x_ref : (TB, F)    f32      w1_ref: (F, H)     bf16    b1_ref: (1, H)    f32
    # w2_ref: (H, Opad)  bf16     b2_ref: (1, Opad)  f32 (padded lanes = -1e30)
    # o_ref : (TB, Opad) f32
    x = x_ref[...].astype(jnp.bfloat16)

    # fc1 + ReLU  (MXU, bf16 operands, f32 accumulation)
    h = jnp.dot(x, w1_ref[...], preferred_element_type=jnp.float32) + b1_ref[...]
    h = jnp.maximum(h, 0.0)

    # fc2 — padded output columns have zero weights and bias -1e30, so they
    # contribute exp() == 0 to the softmax denominator below.
    logits = jnp.dot(h.astype(jnp.bfloat16), w2_ref[...],
                     preferred_element_type=jnp.float32) + b2_ref[...]

    # numerically-stable softmax over the output dim; reciprocal on the EUP.
    m = jnp.max(logits, axis=-1, keepdims=True)
    e = jnp.exp(logits - m)
    inv = pl.reciprocal(jnp.sum(e, axis=-1, keepdims=True), approx=True)
    o_ref[...] = (e * inv).astype(o_ref.dtype)


def pack_params(w1, b1, w2, b2):
    """One-time packing of PyTorch-layout weights. Call once, outside the hot loop.

    w1: (H, F)  b1: (H,)  w2: (O, H)  b2: (O,)
    -> w1 (F, H) bf16, b1 (1, H) f32, w2 (H, Opad) bf16, b2 (1, Opad) f32.
    """
    w1 = jnp.asarray(w1, jnp.float32)
    w2 = jnp.asarray(w2, jnp.float32)
    hidden, flat = w1.shape
    out_dim = w2.shape[0]
    o_pad = max(_LANE, _round_up(out_dim, _LANE))

    w1_t = w1.T.astype(jnp.bfloat16)                                    # (F, H)
    b1_r = jnp.asarray(b1, jnp.float32).reshape(1, hidden)              # (1, H)
    w2_p = jnp.zeros((hidden, o_pad), jnp.float32).at[:, :out_dim].set(w2.T)
    w2_p = w2_p.astype(jnp.bfloat16)                                    # (H, Opad)
    b2_p = jnp.full((1, o_pad), -1e30, jnp.float32)
    b2_p = b2_p.at[0, :out_dim].set(jnp.asarray(b2, jnp.float32))       # (1, Opad)
    return {"w1": w1_t, "b1": b1_r, "w2": w2_p, "b2": b2_p,
            "out_dim": out_dim, "flat": flat}


def _tile_cap_and_vmem_cap():
    """Generation-aware batch-tile cap and scoped-VMEM ceiling."""
    try:
        kind = jax.devices()[0].device_kind.lower()
    except Exception:  # pragma: no cover - defensive; default to v6e-like tiling
        kind = ""
    if "v5" in kind:
        return 128, 96 << 20          # v5e: MXU M-dim is 128; f32 epilogue heavier
    if "v6" in kind:
        return 256, 96 << 20          # v6e: fill the 256-row MXU
    if "v7" in kind:
        return 512, 48 << 20          # v7x: only 64 MiB physical VMEM
    return 256, 48 << 20              # unknown: conservative defaults


@jax.jit
def _forward_2d(x2d, w1, b1, w2, b2):
    """x2d: (B, F) f32. Returns (B_padded, Opad) f32 row-softmax (padded lanes ~0)."""
    b_rows, flat = x2d.shape
    hidden = w1.shape[1]
    o_pad = w2.shape[1]

    cap, vmem_cap = _tile_cap_and_vmem_cap()

    # Batch tile: cover the whole (sublane-rounded) batch in one step up to CAP.
    tb = min(_round_up(b_rows, 8), cap)
    # v7x megacore: keep the single "parallel" grid axis at >= 2 steps for large
    # batches so the work can be split across both TensorCores.
    if cap >= 512 and b_rows > 256:
        tb = min(tb, _round_up((b_rows + 1) // 2, 8))

    pad = (-b_rows) % tb
    if pad:
        x2d = jnp.pad(x2d, ((0, pad), (0, 0)))
    bp = b_rows + pad
    grid = (pl.cdiv(bp, tb),)

    # Advisory cost + explicit VMEM budget (double-buffered inputs & output).
    flops = int(2 * bp * flat * hidden + 2 * bp * hidden * o_pad)
    bytes_accessed = int(bp * flat * 4 + w1.size * 2 + b1.size * 4
                         + w2.size * 2 + b2.size * 4 + bp * o_pad * 4)
    vmem_needed = int(2 * (tb * flat * 4 + w1.size * 2 + b1.size * 4
                           + w2.size * 2 + b2.size * 4 + tb * o_pad * 4))
    vmem_limit = int(min(vmem_cap, max(16 << 20, 2 * vmem_needed)))

    out = pl.pallas_call(
        _mlp_kernel,
        out_shape=jax.ShapeDtypeStruct((bp, o_pad), jnp.float32),
        grid=grid,
        in_specs=[
            pl.BlockSpec((tb, flat), lambda i: (i, 0)),        # x: streamed per batch tile
            pl.BlockSpec((flat, hidden), lambda i: (0, 0)),    # w1: VMEM-resident
            pl.BlockSpec((1, hidden), lambda i: (0, 0)),       # b1
            pl.BlockSpec((hidden, o_pad), lambda i: (0, 0)),   # w2
            pl.BlockSpec((1, o_pad), lambda i: (0, 0)),        # b2
        ],
        out_specs=pl.BlockSpec((tb, o_pad), lambda i: (i, 0)),
        compiler_params=pltpu.CompilerParams(
            dimension_semantics=("parallel",),
            vmem_limit_bytes=vmem_limit),
        cost_estimate=pl.CostEstimate(
            flops=flops,
            transcendentals=int(bp * (o_pad + 1)),
            bytes_accessed=bytes_accessed),
    )(x2d, w1, b1, w2, b2)
    return out


def model_forward(state, params):
    """Single state (C, H, W) -> action_prob (O,).  Matches Model.forward exactly."""
    x = jnp.asarray(state, jnp.float32).reshape(1, params["flat"])
    out = _forward_2d(x, params["w1"], params["b1"], params["w2"], params["b2"])
    return out[0, :params["out_dim"]]


def model_forward_batch(states, params):
    """(B, C, H, W) -> (B, O); per-state softmax (batched form of the same forward)."""
    b = states.shape[0]
    x = jnp.asarray(states, jnp.float32).reshape(b, params["flat"])
    out = _forward_2d(x, params["w1"], params["b1"], params["w2"], params["b2"])
    return out[:b, :params["out_dim"]]


def _xavier_normal(key, shape):
    # shape = (out_features, in_features); gain = 1 (matches nn.init.xavier_normal)
    fan_out, fan_in = shape
    std = (2.0 / (fan_in + fan_out)) ** 0.5
    return std * jax.random.normal(key, shape, dtype=jnp.float32)


def _linear_bias(key, fan_in, out_features):
    # PyTorch default Linear bias init: U(-1/sqrt(fan_in), 1/sqrt(fan_in))
    bound = 1.0 / (fan_in ** 0.5)
    return jax.random.uniform(key, (out_features,), jnp.float32, -bound, bound)


if __name__ == "__main__":
    # Shapes consistent with the module: input_shape=(C,H,W)=(4,16,16) -> F=1024
    input_shape = (4, 16, 16)
    output_shape = 8
    hidden = _HIDDEN
    flatten = input_shape[0] * input_shape[1] * input_shape[2]

    key = jax.random.PRNGKey(0)
    k_x, k_w1, k_b1, k_w2, k_b2, k_xb, k_xl = jax.random.split(key, 7)

    w1 = _xavier_normal(k_w1, (hidden, flatten))        # fc1.weight (256, F)
    b1 = _linear_bias(k_b1, flatten, hidden)            # fc1.bias   (256,)
    w2 = _xavier_normal(k_w2, (output_shape, hidden))   # fc2.weight (O, 256)
    b2 = _linear_bias(k_b2, hidden, output_shape)       # fc2.bias   (O,)

    params = pack_params(w1, b1, w2, b2)                # one-time packing (bf16, padded)

    # --- single state: exactly the module's forward ---
    state = jax.random.normal(k_x, input_shape, dtype=jnp.float32)
    action_prob = jax.block_until_ready(model_forward(state, params))

    x_flat = state.reshape(-1)
    ref_h = jnp.maximum(x_flat @ w1.T + b1, 0.0)
    ref = jax.nn.softmax(ref_h @ w2.T + b2, axis=0)
    assert action_prob.shape == (output_shape,)
    assert jnp.allclose(action_prob, ref, atol=1e-2), (action_prob, ref)
    assert jnp.allclose(jnp.sum(action_prob), 1.0, atol=1e-2)

    # --- small batch of states: now a SINGLE grid step (tb covers the batch) ---
    batch = 16
    states = jax.random.normal(k_xb, (batch,) + input_shape, dtype=jnp.float32)
    probs = jax.block_until_ready(model_forward_batch(states, params))

    xb = states.reshape(batch, -1)
    ref_b = jax.nn.softmax(jnp.maximum(xb @ w1.T + b1, 0.0) @ w2.T + b2, axis=-1)
    assert probs.shape == (batch, output_shape)
    assert jnp.allclose(probs, ref_b, atol=1e-2)
    assert jnp.allclose(jnp.sum(probs, axis=-1), jnp.ones((batch,)), atol=1e-2)

    # --- larger batch: exercises the multi-step tiled/parallel grid path ---
    batch_l = 272
    states_l = jax.random.normal(k_xl, (batch_l,) + input_shape, dtype=jnp.float32)
    probs_l = jax.block_until_ready(model_forward_batch(states_l, params))

    xl = states_l.reshape(batch_l, -1)
    ref_l = jax.nn.softmax(jnp.maximum(xl @ w1.T + b1, 0.0) @ w2.T + b2, axis=-1)
    assert probs_l.shape == (batch_l, output_shape)
    assert jnp.allclose(probs_l, ref_l, atol=1e-2)
    assert jnp.allclose(jnp.sum(probs_l, axis=-1), jnp.ones((batch_l,)), atol=1e-2)

    print("KERNEL_OK")
</pallas_src>

<mosaic_0001>
module attributes {stable_mosaic.version = 11 : i64} {
  func.func @_mlp_kernel(%arg0: i32, %arg1: memref<8x1024xf32, #tpu.memory_space<vmem>>, %arg2: memref<1024x256xbf16, #tpu.memory_space<vmem>>, %arg3: memref<1x256xf32, #tpu.memory_space<vmem>>, %arg4: memref<256x128xbf16, #tpu.memory_space<vmem>>, %arg5: memref<1x128xf32, #tpu.memory_space<vmem>>, %arg6: memref<8x128xf32, #tpu.memory_space<vmem>>) attributes {dimension_semantics = [#tpu.dimension_semantics<parallel>], iteration_bounds = array<i64: 1>, scalar_prefetch = 0 : i64, scratch_operands = 0 : i64, tpu.core_type = #tpu.core_type<tc>, window_params = [{transform_indices = @transform_0, window_bounds = array<i64: 8, 1024>}, {pipeline_mode = #tpu.pipeline_mode<synchronous>, transform_indices = @transform_1, window_bounds = array<i64: 1024, 256>}, {pipeline_mode = #tpu.pipeline_mode<synchronous>, transform_indices = @transform_2, window_bounds = array<i64: 1, 256>}, {pipeline_mode = #tpu.pipeline_mode<synchronous>, transform_indices = @transform_3, window_bounds = array<i64: 256, 128>}, {pipeline_mode = #tpu.pipeline_mode<synchronous>, transform_indices = @transform_4, window_bounds = array<i64: 1, 128>}, {transform_indices = @transform_5, window_bounds = array<i64: 8, 128>}]} {
    %c0 = arith.constant 0 : index
    %c0_0 = arith.constant 0 : index
    %0 = vector.load %arg1[%c0, %c0_0] : memref<8x1024xf32, #tpu.memory_space<vmem>>, vector<8x1024xf32>
    %1 = arith.truncf %0 : vector<8x1024xf32> to vector<8x1024xbf16>
    %c0_1 = arith.constant 0 : index
    %c0_2 = arith.constant 0 : index
    %2 = vector.load %arg2[%c0_1, %c0_2] : memref<1024x256xbf16, #tpu.memory_space<vmem>>, vector<1024x256xbf16>
    %cst = arith.constant dense<0.000000e+00> : vector<8x256xf32>
    %3 = tpu.matmul %1, %2, %cst {dimension_numbers = #tpu.dot_dimension_numbers<[1], [0], [0], [1], [0, 0, 1, 1], [], []>} : vector<8x1024xbf16>, vector<1024x256xbf16>, vector<8x256xf32> -> vector<8x256xf32>
    %c0_3 = arith.constant 0 : index
    %c0_4 = arith.constant 0 : index
    %4 = vector.load %arg3[%c0_3, %c0_4] : memref<1x256xf32, #tpu.memory_space<vmem>>, vector<1x256xf32>
    %5 = vector.broadcast %4 : vector<1x256xf32> to vector<8x256xf32>
    %6 = arith.addf %3, %5 : vector<8x256xf32>
    %cst_5 = arith.constant 0.000000e+00 : f32
    %7 = vector.broadcast %cst_5 : f32 to vector<8x256xf32>
    %8 = arith.maximumf %6, %7 : vector<8x256xf32>
    %9 = arith.truncf %8 : vector<8x256xf32> to vector<8x256xbf16>
    %c0_6 = arith.constant 0 : index
    %c0_7 = arith.constant 0 : index
    %10 = vector.load %arg4[%c0_6, %c0_7] : memref<256x128xbf16, #tpu.memory_space<vmem>>, vector<256x128xbf16>
    %cst_8 = arith.constant dense<0.000000e+00> : vector<8x128xf32>
    %11 = tpu.matmul %9, %10, %cst_8 {dimension_numbers = #tpu.dot_dimension_numbers<[1], [0], [0], [1], [0, 0, 1, 1], [], []>} : vector<8x256xbf16>, vector<256x128xbf16>, vector<8x128xf32> -> vector<8x128xf32>
    %c0_9 = arith.constant 0 : index
    %c0_10 = arith.constant 0 : index
    %12 = vector.load %arg5[%c0_9, %c0_10] : memref<1x128xf32, #tpu.memory_space<vmem>>, vector<1x128xf32>
    %13 = vector.broadcast %12 : vector<1x128xf32> to vector<8x128xf32>
    %14 = arith.addf %11, %13 : vector<8x128xf32>
    %cst_11 = arith.constant dense<0xFF800000> : vector<8xf32>
    %15 = vector.multi_reduction <maximumf>, %14, %cst_11 [1] : vector<8x128xf32> to vector<8xf32>
    %16 = vector.shape_cast %15 : vector<8xf32> to vector<8x1xf32>
    %17 = vector.broadcast %16 : vector<8x1xf32> to vector<8x128xf32>
    %18 = arith.subf %14, %17 : vector<8x128xf32>
    %19 = math.exp %18 : vector<8x128xf32>
    %cst_12 = arith.constant dense<0.000000e+00> : vector<8xf32>
    %20 = vector.multi_reduction <add>, %19, %cst_12 [1] : vector<8x128xf32> to vector<8xf32>
    %21 = vector.shape_cast %20 : vector<8xf32> to vector<8x1xf32>
    %22 = tpu.reciprocal %21 {approx = true} : vector<8x1xf32> -> vector<8x1xf32>
    %23 = vector.broadcast %22 : vector<8x1xf32> to vector<8x128xf32>
    %24 = arith.mulf %19, %23 : vector<8x128xf32>
    %c0_13 = arith.constant 0 : index
    %c0_14 = arith.constant 0 : index
    %25 = vector.load %arg6[%c0_13, %c0_14] : memref<8x128xf32, #tpu.memory_space<vmem>>, vector<8x128xf32>
    tpu.vector_store %arg6[%c0_13, %c0_14], %24 {strides = array<i32>} : memref<8x128xf32, #tpu.memory_space<vmem>>, vector<8x128xf32>,
    return
  }
  func.func @transform_0(%arg0: i32) -> (i32, i32) {
    %c0_i32 = arith.constant 0 : i32
    %c0_i32_0 = arith.constant 0 : i32
    return %arg0, %c0_i32 : i32, i32
  }
  func.func @transform_1(%arg0: i32) -> (i32, i32) {
    %c0_i32 = arith.constant 0 : i32
    %c0_i32_0 = arith.constant 0 : i32
    %c0_i32_1 = arith.constant 0 : i32
    return %c0_i32, %c0_i32_0 : i32, i32
  }
  func.func @transform_2(%arg0: i32) -> (i32, i32) {
    %c0_i32 = arith.constant 0 : i32
    %c0_i32_0 = arith.constant 0 : i32
    %c0_i32_1 = arith.constant 0 : i32
    return %c0_i32, %c0_i32_0 : i32, i32
  }
  func.func @transform_3(%arg0: i32) -> (i32, i32) {
    %c0_i32 = arith.constant 0 : i32
    %c0_i32_0 = arith.constant 0 : i32
    %c0_i32_1 = arith.constant 0 : i32
    return %c0_i32, %c0_i32_0 : i32, i32
  }
  func.func @transform_4(%arg0: i32) -> (i32, i32) {
    %c0_i32 = arith.constant 0 : i32
    %c0_i32_0 = arith.constant 0 : i32
    %c0_i32_1 = arith.constant 0 : i32
    return %c0_i32, %c0_i32_0 : i32, i32
  }
  func.func @transform_5(%arg0: i32) -> (i32, i32) {
    %c0_i32 = arith.constant 0 : i32
    %c0_i32_0 = arith.constant 0 : i32
    return %arg0, %c0_i32 : i32, i32
  }
}

</mosaic_0001>

<bundles_post_ra>
// kernel: _forward_2d.1
= control target key start
LH: loop header
LB: loop body
LE: loop exit
PB: predicated region body
PF: predicated region fallthrough
CT: control target
= control target key end

     0   :  { %10 = vsyncpa [#allocation3], 0  ;;  %s1788_s0 = inlined_call_operand.vmem [shape: f32[8,1024], index: 0, kind: input, shape index: {}]   ;;  %s1789_s1 = inlined_call_operand.hbm [shape: bf16[1024,256], index: 1, kind: input, shape index: {}]   ;;  %s1790_s2 = inlined_call_operand.vmem [shape: f32[1,256], index: 2, kind: input, shape index: {}]   ;;  %s1791_s3 = inlined_call_operand.hbm [shape: bf16[256,128], index: 3, kind: input, shape index: {}]   ;;  %s1792_s4 = inlined_call_operand.vmem [shape: f32[1,128], index: 4, kind: input, shape index: {}]   ;;  %s1793_s5 = inlined_call_operand.hbm [shape: f32[8,128], index: 5, kind: output, shape index: {}]  }
   0x1   :  { %11 = vsyncpa [#allocation6], 0 }
   0x2   :  { %12 = vsyncpa [#allocation4], 0  ;;  %s1685_s18 = smov [#allocation2]   ;;  %s1613_s22 = scalar_lea.hbm %s1789_s1, 16384 }
   0x3   :  { %s20_s19 = sshll.u32 %s1685_s18, 4  ;;  %p1614_p0 = scmp.ne.s32.totalorder %s1789_s1, %s1613_s22  ;;  %s21_s19 = int_to_ptr.vmem [resolvable:$true] %s20_s19 }
   0x4   :  { %p1617_p1 = scmp.lt.u32.totalorder %s1613_s22, %s1789_s1 }
   0x6   :  { %p1619_p2 = pnand %p1617_p1, %p1614_p0 }
   0x8   :  { %1622 = shalt.err (!%p1619_p2)
}
   0x9   :  { %s1623_s27 = scalar_lea.vmem %s21_s19, 16384  ;;  %p1628_p4 = scmp.lt.s32.totalorder %s21_s19, %s21_s19 }
   0xa   :  { %p1624_p3 = scmp.ne.s32.totalorder %s21_s19, %s1623_s27  ;;  %p1629_p5 = scmp.lt.s32.totalorder %s1623_s27, %s1623_s27 }
   0xc   :  { %p1630_p6 = por %p1629_p5, %p1628_p4 }
   0xe   :  { %p1631_p7 = pnand %p1630_p6, %p1624_p3 }
  0x10   :  { %1634 = shalt.err (!%p1631_p7)
}
  0x11   :  { %s1686_s28 = smov 128   ;;  %s1687_s29 = smov 8  }
  0x12   :  { %26 = dma.hbm_to_vmem [thread:$0]  %s1789_s1, 16384, %s21_s19, [#allocation3], %s1686_s28, %s1686_s28, %s1687_s29  }
  0x13   :  { %s1688_s7 = smov [#allocation5]   ;;  %s1635_s11 = scalar_lea.hbm %s1791_s3, 2048 }
  0x14   :  { %s34_s8 = sshll.u32 %s1688_s7, 4  ;;  %p1636_p8 = scmp.ne.s32.totalorder %s1791_s3, %s1635_s11  ;;  %s35_s8 = int_to_ptr.vmem [resolvable:$true] %s34_s8 }
  0x15   :  { %p1639_p9 = scmp.lt.u32.totalorder %s1635_s11, %s1791_s3 }
  0x17   :  { %p1641_p10 = pnand %p1639_p9, %p1636_p8 }
  0x19   :  { %1644 = shalt.err (!%p1641_p10)
}
  0x1a   :  { %s1645_s16 = scalar_lea.vmem %s35_s8, 2048  ;;  %p1650_p12 = scmp.lt.s32.totalorder %s35_s8, %s35_s8 }
  0x1b   :  { %p1646_p11 = scmp.ne.s32.totalorder %s35_s8, %s1645_s16  ;;  %p1651_p13 = scmp.lt.s32.totalorder %s1645_s16, %s1645_s16 }
  0x1d   :  { %p1652_p0 = por %p1651_p13, %p1650_p12 }
  0x1f   :  { %p1653_p1 = pnand %p1652_p0, %p1646_p11 }
  0x21   :  { %1656 = shalt.err (!%p1653_p1)
}
  0x22   :  { %s1689_s1 = smov 64   ;;  %s1690_s17 = smov 4  }
  0x23   :  { %40 = dma.hbm_to_vmem [thread:$0]  %s1791_s3, 2048, %s35_s8, [#allocation6], %s1689_s1, %s1689_s1, %s1690_s17  }
  0x24   :  { %1679 = dma.done.wait [#allocation3], 16384  }
  0x25   :  { %1680 = vsyncadd [#allocation3], 4294950912 }
  0x26   :  { %1681 = dma.done.wait [#allocation6], 2048  }
  0x27   :  { %1682 = vsyncadd [#allocation6], 4294965248  ;;  %v1401_v0 = vld [vmem:[#allocation2 + $0x4] ss:$8 sps:$4 sm:$0xff]   ;;  %v1405_v2 = vld [vmem:[#allocation2] ss:$8 sps:$4 sm:$0xff]  }
  0x28   :  { %v1403_v1 = vld [vmem:[#allocation2 + $0x204] ss:$8 sps:$4 sm:$0xff]   ;;  %846 = vmatprep.subr.bf16.mxu1 %v1401_v0  ;;  %v1406_v3 = vld [vmem:[#allocation2 + $0x200] ss:$8 sps:$4 sm:$0xff]   ;;  %v1407_v4 = vld [vmem:[#allocation2 + $0x14] ss:$8 sps:$4 sm:$0xff]  }
  0x29   :  { %928 = vmatprep.subr.bf16.mxu0 %v1403_v1  ;;  %847 = vmatpush1.bf16.msra.mxu1 %v1405_v2  ;;  %v1409_v5 = vld [vmem:[#allocation2 + $0x214] ss:$8 sps:$4 sm:$0xff]   ;;  %v1411_v6 = vld [vmem:[#allocation2 + $0x10] ss:$8 sps:$4 sm:$0xff]   ;;  %v1413_v8 = vld [vmem:[#allocation2 + $0x24] ss:$8 sps:$4 sm:$0xff]  }
  0x2a   :  { %929 = vmatpush1.bf16.msra.mxu0 %v1406_v3  ;;  %848 = vmatprep.subr.bf16.mxu1 %v1407_v4  ;;  %v1412_v7 = vld [vmem:[#allocation2 + $0x210] ss:$8 sps:$4 sm:$0xff]   ;;  %v1415_v9 = vld [vmem:[#allocation2 + $0x224] ss:$8 sps:$4 sm:$0xff]   ;;  %v1417_v10 = vld [vmem:[#allocation2 + $0x20] ss:$8 sps:$4 sm:$0xff]  }
  0x2b   :  { %930 = vmatprep.subr.bf16.mxu0 %v1409_v5  ;;  %v1418_v11 = vld [vmem:[#allocation2 + $0x220] ss:$8 sps:$4 sm:$0xff]   ;;  %v1419_v12 = vld [vmem:[#allocation2 + $0x34] ss:$8 sps:$4 sm:$0xff]   ;;  %v1423_v14 = vld [vmem:[#allocation2 + $0x30] ss:$8 sps:$4 sm:$0xff]  }
  0x2c   :  { %v1421_v13 = vld [vmem:[#allocation2 + $0x234] ss:$8 sps:$4 sm:$0xff]   ;;  %v1424_v15 = vld [vmem:[#allocation2 + $0x230] ss:$8 sps:$4 sm:$0xff]   ;;  %v1425_v16 = vld [vmem:[#allocation2 + $0x44] ss:$8 sps:$4 sm:$0xff]  }
  0x2d   :  { %849 = vmatpush1.bf16.msra.mxu1 %v1411_v6  ;;  %v1427_v17 = vld [vmem:[#allocation2 + $0x244] ss:$8 sps:$4 sm:$0xff]   ;;  %v1429_v18 = vld [vmem:[#allocation2 + $0x40] ss:$8 sps:$4 sm:$0xff]   ;;  %v1431_v20 = vld [vmem:[#allocation2 + $0x54] ss:$8 sps:$4 sm:$0xff]  }
  0x2e   :  { %931 = vmatpush1.bf16.msra.mxu0 %v1412_v7  ;;  %850 = vmatprep.subr.bf16.mxu1 %v1413_v8  ;;  %v1430_v19 = vld [vmem:[#allocation2 + $0x240] ss:$8 sps:$4 sm:$0xff]   ;;  %v1433_v21 = vld [vmem:[#allocation2 + $0x254] ss:$8 sps:$4 sm:$0xff]   ;;  %v1435_v22 = vld [vmem:[#allocation2 + $0x50] ss:$8 sps:$4 sm:$0xff]  }
  0x2f   :  { %932 = vmatprep.subr.bf16.mxu0 %v1415_v9  ;;  %v1436_v23 = vld [vmem:[#allocation2 + $0x250] ss:$8 sps:$4 sm:$0xff]   ;;  %v1437_v24 = vld [vmem:[#allocation2 + $0x64] ss:$8 sps:$4 sm:$0xff]   ;;  %v1441_v26 = vld [vmem:[#allocation2 + $0x60] ss:$8 sps:$4 sm:$0xff]  }
  0x30   :  { %v1439_v25 = vld [vmem:[#allocation2 + $0x264] ss:$8 sps:$4 sm:$0xff]   ;;  %v1442_v27 = vld [vmem:[#allocation2 + $0x260] ss:$8 sps:$4 sm:$0xff]   ;;  %v1443_v28 = vld [vmem:[#allocation2 + $0x74] ss:$8 sps:$4 sm:$0xff]  }
  0x31   :  { %851 = vmatpush1.bf16.msra.mxu1 %v1417_v10  ;;  %v1445_v29 = vld [vmem:[#allocation2 + $0x274] ss:$8 sps:$4 sm:$0xff]   ;;  %v1447_v30 = vld [vmem:[#allocation2 + $0x70] ss:$8 sps:$4 sm:$0xff]   ;;  %v1449_v32 = vld [vmem:[#allocation2 + $0x84] ss:$8 sps:$4 sm:$0xff]  }
  0x32   :  { %933 = vmatpush1.bf16.msra.mxu0 %v1418_v11  ;;  %852 = vmatprep.subr.bf16.mxu1 %v1419_v12  ;;  %v1448_v31 = vld [vmem:[#allocation2 + $0x270] ss:$8 sps:$4 sm:$0xff]   ;;  %v1451_v33 = vld [vmem:[#allocation2 + $0x284] ss:$8 sps:$4 sm:$0xff]   ;;  %v1453_v34 = vld [vmem:[#allocation2 + $0x80] ss:$8 sps:$4 sm:$0xff]  }
  0x33   :  { %934 = vmatprep.subr.bf16.mxu0 %v1421_v13  ;;  %v1454_v35 = vld [vmem:[#allocation2 + $0x280] ss:$8 sps:$4 sm:$0xff]   ;;  %v1455_v36 = vld [vmem:[#allocation2 + $0x94] ss:$8 sps:$4 sm:$0xff]   ;;  %v1459_v38 = vld [vmem:[#allocation2 + $0x90] ss:$8 sps:$4 sm:$0xff]  }
  0x34   :  { %v1457_v37 = vld [vmem:[#allocation2 + $0x294] ss:$8 sps:$4 sm:$0xff]   ;;  %v1460_v39 = vld [vmem:[#allocation2 + $0x290] ss:$8 sps:$4 sm:$0xff]   ;;  %v1461_v40 = vld [vmem:[#allocation2 + $0xa4] ss:$8 sps:$4 sm:$0xff]  }
  0x35   :  { %853 = vmatpush1.bf16.msra.mxu1 %v1423_v14  ;;  %v1463_v41 = vld [vmem:[#allocation2 + $0x2a4] ss:$8 sps:$4 sm:$0xff]   ;;  %v1465_v42 = vld [vmem:[#allocation2 + $0xa0] ss:$8 sps:$4 sm:$0xff]   ;;  %v1467_v44 = vld [vmem:[#allocation2 + $0xb4] ss:$8 sps:$4 sm:$0xff]  }
  0x36   :  { %935 = vmatpush1.bf16.msra.mxu0 %v1424_v15  ;;  %854 = vmatprep.subr.bf16.mxu1 %v1425_v16  ;;  %v1466_v43 = vld [vmem:[#allocation2 + $0x2a0] ss:$8 sps:$4 sm:$0xff]   ;;  %v1469_v45 = vld [vmem:[#allocation2 + $0x2b4] ss:$8 sps:$4 sm:$0xff]   ;;  %v1471_v47 = vld [vmem:[#allocation2 + $0xb0] ss:$8 sps:$4 sm:$0xff]  }
  0x37   :  { %936 = vmatprep.subr.bf16.mxu0 %v1427_v17  ;;  %v51_v46 = vld [vmem:[%s1788_s0 + $0x8] sm:$0xff]  ;;  %v1472_v49 = vld [vmem:[#allocation2 + $0x2b0] ss:$8 sps:$4 sm:$0xff]   ;;  %v1479_v56 = vld [vmem:[#allocation2 + $0xd4] ss:$8 sps:$4 sm:$0xff]   ;;  %s1691_s12 = smov [#allocation7]  }
  0x38   :  { %v59_v48 = vpack.c.bf16 %v51_v46, %v51_v46  ;;  %v55_v50 = vld [vmem:[%s1788_s0 + $0x28] sm:$0xff]  ;;  %v1481_v57 = vld [vmem:[#allocation2 + $0x2d4] ss:$8 sps:$4 sm:$0xff]   ;;  %v1483_v58 = vld [vmem:[#allocation2 + $0xd0] ss:$8 sps:$4 sm:$0xff]   ;;  %s1205_s13 = sshll.u32 %s1691_s12, 4  ;;  %s1206_s13 = int_to_ptr.vmem [resolvable:$true] %s1205_s13 }
  0x39   :  { %855 = vmatpush1.bf16.msra.mxu1 %v1429_v18  ;;  %v1473_v51 = vld [vmem:[#allocation2 + $0xc4] ss:$8 sps:$4 sm:$0xff]   ;;  %v63_v53 = vpack.c.bf16 %v55_v50, %v55_v50  ;;  %v1477_v54 = vld [vmem:[#allocation2 + $0xc0] ss:$8 sps:$4 sm:$0xff]   ;;  %v1484_v59 = vld [vmem:[#allocation2 + $0x2d0] ss:$8 sps:$4 sm:$0xff]   ;;  %p1662_p3 = scmp.lt.s32.totalorder %s1206_s13, %s1206_s13 }
  0x3a   :  { %937 = vmatpush1.bf16.msra.mxu0 %v1430_v19  ;;  %856 = vmatprep.subr.bf16.mxu1 %v1431_v20  ;;  %v1475_v52 = vld [vmem:[#allocation2 + $0x2c4] ss:$8 sps:$4 sm:$0xff]   ;;  %v1478_v55 = vld [vmem:[#allocation2 + $0x2c0] ss:$8 sps:$4 sm:$0xff]   ;;  %v1491_v0 = vld [vmem:[#allocation2 + $0xf4] ss:$8 sps:$4 sm:$0xff]  }
  0x3b   :  { %938 = vmatprep.subr.bf16.mxu0 %v1433_v21  ;;  %878 = vmatprep.mubr.bf16.mxu1 %v59_v48  ;;  %v1485_v60 = vld [vmem:[#allocation2 + $0xe4] ss:$8 sps:$4 sm:$0xff]   ;;  %v1489_v62 = vld [vmem:[#allocation2 + $0xe0] ss:$8 sps:$4 sm:$0xff]   ;;  %v1493_v1 = vld [vmem:[#allocation2 + $0x2f4] ss:$8 sps:$4 sm:$0xff]  }
  0x3c   :  { %960 = vmatprep.mubr.bf16.mxu0 %v63_v53  ;;  %v1487_v61 = vld [vmem:[#allocation2 + $0x2e4] ss:$8 sps:$4 sm:$0xff]   ;;  %v1490_v63 = vld [vmem:[#allocation2 + $0x2e0] ss:$8 sps:$4 sm:$0xff]   ;;  %v1495_v2 = vld [vmem:[#allocation2 + $0xf0] ss:$8 sps:$4 sm:$0xff]  }
  0x3d   :  { %857 = vmatpush1.bf16.msra.mxu1 %v1435_v22  ;;  %v1496_v3 = vld [vmem:[#allocation2 + $0x2f0] ss:$8 sps:$4 sm:$0xff]   ;;  %v1499_v4 = vld [vmem:[#allocation2 + $0x104] ss:$8 sps:$4 sm:$0xff]   ;;  %v1497_v8 = vld [vmem:[#allocation2 + $0x100] ss:$8 sps:$4 sm:$0xff]  }
  0x3e   :  { %939 = vmatpush1.bf16.msra.mxu0 %v1436_v23  ;;  %858 = vmatprep.subr.bf16.mxu1 %v1437_v24  ;;  %v50_v5 = vld [vmem:[%s1788_s0] sm:$0xff]  ;;  %v1505_v12 = vld [vmem:[#allocation2 + $0x114] ss:$8 sps:$4 sm:$0xff]   ;;  %v1503_v14 = vld [vmem:[#allocation2 + $0x110] ss:$8 sps:$4 sm:$0xff]  }
  0x3f   :  { %940 = vmatprep.subr.bf16.mxu0 %v1439_v25  ;;  %v54_v6 = vld [vmem:[%s1788_s0 + $0x20] sm:$0xff]  ;;  %v58_v10 = vpack.c.bf16 %v50_v5, %v50_v5  ;;  %v1508_v13 = vld [vmem:[#allocation2 + $0x314] ss:$8 sps:$4 sm:$0xff]   ;;  %v1506_v15 = vld [vmem:[#allocation2 + $0x310] ss:$8 sps:$4 sm:$0xff]  }
  0x40   :  { %v1502_v7 = vld [vmem:[#allocation2 + $0x304] ss:$8 sps:$4 sm:$0xff]   ;;  %v1500_v9 = vld [vmem:[#allocation2 + $0x300] ss:$8 sps:$4 sm:$0xff]   ;;  %v62_v11 = vpack.c.bf16 %v54_v6, %v54_v6  ;;  %v1517_v20 = vld [vmem:[#allocation2 + $0x134] ss:$8 sps:$4 sm:$0xff]  }
  0x41   :  { %859 = vmatpush1.bf16.msra.mxu1 %v1441_v26  ;;  %v1511_v16 = vld [vmem:[#allocation2 + $0x124] ss:$8 sps:$4 sm:$0xff]   ;;  %v1509_v18 = vld [vmem:[#allocation2 + $0x120] ss:$8 sps:$4 sm:$0xff]   ;;  %v1520_v21 = vld [vmem:[#allocation2 + $0x334] ss:$8 sps:$4 sm:$0xff]  }
  0x42   :  { %941 = vmatpush1.bf16.msra.mxu0 %v1442_v27  ;;  %860 = vmatprep.subr.bf16.mxu1 %v1443_v28  ;;  %v1514_v17 = vld [vmem:[#allocation2 + $0x324] ss:$8 sps:$4 sm:$0xff]   ;;  %v1512_v19 = vld [vmem:[#allocation2 + $0x320] ss:$8 sps:$4 sm:$0xff]   ;;  %v1515_v22 = vld [vmem:[#allocation2 + $0x130] ss:$8 sps:$4 sm:$0xff]  }
  0x43   :  { %942 = vmatprep.subr.bf16.mxu0 %v1445_v29  ;;  %v1518_v23 = vld [vmem:[#allocation2 + $0x330] ss:$8 sps:$4 sm:$0xff]   ;;  %v1523_v24 = vld [vmem:[#allocation2 + $0x144] ss:$8 sps:$4 sm:$0xff]   ;;  %v1521_v26 = vld [vmem:[#allocation2 + $0x140] ss:$8 sps:$4 sm:$0xff]  }
  0x44   :  { %v1526_v25 = vld [vmem:[#allocation2 + $0x344] ss:$8 sps:$4 sm:$0xff]   ;;  %v1524_v27 = vld [vmem:[#allocation2 + $0x340] ss:$8 sps:$4 sm:$0xff]   ;;  %v1529_v28 = vld [vmem:[#allocation2 + $0x154] ss:$8 sps:$4 sm:$0xff]  }
  0x45   :  { %861 = vmatpush1.bf16.msra.mxu1 %v1447_v30  ;;  %v1532_v29 = vld [vmem:[#allocation2 + $0x354] ss:$8 sps:$4 sm:$0xff]   ;;  %v1527_v30 = vld [vmem:[#allocation2 + $0x150] ss:$8 sps:$4 sm:$0xff]   ;;  %v1545_v46 = vld [vmem:[#allocation2 + $0x180] ss:$8 sps:$4 sm:$0xff]  }
  0x46   :  { %943 = vmatpush1.bf16.msra.mxu0 %v1448_v31  ;;  %862 = vmatprep.subr.bf16.mxu1 %v1449_v32  ;;  %v1530_v31 = vld [vmem:[#allocation2 + $0x350] ss:$8 sps:$4 sm:$0xff]   ;;  %v1535_v32 = vld [vmem:[#allocation2 + $0x164] ss:$8 sps:$4 sm:$0xff]   ;;  %v1553_v48 = vld [vmem:[#allocation2 + $0x194] ss:$8 sps:$4 sm:$0xff]  }
  0x47   :  { %944 = vmatprep.subr.bf16.mxu0 %v1451_v33  ;;  %v1538_v33 = vld [vmem:[#allocation2 + $0x364] ss:$8 sps:$4 sm:$0xff]   ;;  %v1551_v50 = vld [vmem:[#allocation2 + $0x190] ss:$8 sps:$4 sm:$0xff]   ;;  %v1581_v6 = vld [vmem:[#allocation2 + $0x1e0] ss:$8 sps:$4 sm:$0xff]  }
  0x48   :  { %v1562_v53 = vld [vmem:[#allocation2 + $0x3a4] ss:$8 sps:$4 sm:$0xff]  }
  0x49   :  { %863 = vmatpush1.bf16.msra.mxu1 %v1453_v34  ;;  %v53_v34 = vld [vmem:[%s1788_s0 + $0x18] sm:$0xff]  ;;  %v1586_v5 = vld [vmem:[#allocation2 + $0x3e4] ss:$8 sps:$4 sm:$0xff]  }
  0x4a   :  { %945 = vmatpush1.bf16.msra.mxu0 %v1454_v35  ;;  %864 = vmatprep.subr.bf16.mxu1 %v1455_v36  ;;  %v1533_v35 = vld [vmem:[#allocation2 + $0x160] ss:$8 sps:$4 sm:$0xff]  }
  0x4b   :  { %946 = vmatprep.subr.bf16.mxu0 %v1457_v37  ;;  %v1536_v36 = vld [vmem:[#allocation2 + $0x360] ss:$8 sps:$4 sm:$0xff]   ;;  %v61_v37 = vpack.c.bf16 %v53_v34, %v53_v34 }
  0x4d   :  { %865 = vmatpush1.bf16.msra.mxu1 %v1459_v38  ;;  %v57_v38 = vld [vmem:[%s1788_s0 + $0x38] sm:$0xff] }
  0x4e   :  { %947 = vmatpush1.bf16.msra.mxu0 %v1460_v39  ;;  %866 = vmatprep.subr.bf16.mxu1 %v1461_v40  ;;  %v1541_v39 = vld [vmem:[#allocation2 + $0x174] ss:$8 sps:$4 sm:$0xff]   ;;  %v65_v40 = vpack.c.bf16 %v57_v38, %v57_v38 }
  0x4f   :  { %948 = vmatprep.subr.bf16.mxu0 %v1463_v41  ;;  %v1544_v41 = vld [vmem:[#allocation2 + $0x374] ss:$8 sps:$4 sm:$0xff]  }
  0x51   :  { %867 = vmatpush1.bf16.msra.mxu1 %v1465_v42  ;;  %v1539_v42 = vld [vmem:[#allocation2 + $0x170] ss:$8 sps:$4 sm:$0xff]  }
  0x52   :  { %949 = vmatpush1.bf16.msra.mxu0 %v1466_v43  ;;  %868 = vmatprep.subr.bf16.mxu1 %v1467_v44  ;;  %v1542_v43 = vld [vmem:[#allocation2 + $0x370] ss:$8 sps:$4 sm:$0xff]   ;;  %v1547_v44 = vld [vmem:[#allocation2 + $0x184] ss:$8 sps:$4 sm:$0xff]  }
  0x53   :  { %950 = vmatprep.subr.bf16.mxu0 %v1469_v45  ;;  %v1550_v45 = vld [vmem:[#allocation2 + $0x384] ss:$8 sps:$4 sm:$0xff]  }
  0x55   :  { %869 = vmatpush1.bf16.msra.mxu1 %v1471_v47  ;;  %v1548_v47 = vld [vmem:[#allocation2 + $0x380] ss:$8 sps:$4 sm:$0xff]  }
  0x56   :  { %951 = vmatpush1.bf16.msra.mxu0 %v1472_v49  ;;  %870 = vmatprep.subr.bf16.mxu1 %v1473_v51  ;;  %v1556_v49 = vld [vmem:[#allocation2 + $0x394] ss:$8 sps:$4 sm:$0xff]   ;;  %v1554_v51 = vld [vmem:[#allocation2 + $0x390] ss:$8 sps:$4 sm:$0xff]  }
  0x57   :  { %952 = vmatprep.subr.bf16.mxu0 %v1475_v52  ;;  %v1559_v52 = vld [vmem:[#allocation2 + $0x1a4] ss:$8 sps:$4 sm:$0xff]  }
  0x59   :  { %871 = vmatpush1.bf16.msra.mxu1 %v1477_v54  ;;  %v1557_v54 = vld [vmem:[#allocation2 + $0x1a0] ss:$8 sps:$4 sm:$0xff]  }
  0x5a   :  { %953 = vmatpush1.bf16.msra.mxu0 %v1478_v55  ;;  %872 = vmatprep.subr.bf16.mxu1 %v1479_v56  ;;  %v1560_v55 = vld [vmem:[#allocation2 + $0x3a0] ss:$8 sps:$4 sm:$0xff]   ;;  %v1565_v56 = vld [vmem:[#allocation2 + $0x1b4] ss:$8 sps:$4 sm:$0xff]  }
  0x5b   :  { %954 = vmatprep.subr.bf16.mxu0 %v1481_v57  ;;  %v1568_v57 = vld [vmem:[#allocation2 + $0x3b4] ss:$8 sps:$4 sm:$0xff]  }
  0x5d   :  { %873 = vmatpush1.bf16.msra.mxu1 %v1483_v58  ;;  %v1563_v58 = vld [vmem:[#allocation2 + $0x1b0] ss:$8 sps:$4 sm:$0xff]  }
  0x5e   :  { %955 = vmatpush1.bf16.msra.mxu0 %v1484_v59  ;;  %874 = vmatprep.subr.bf16.mxu1 %v1485_v60  ;;  %v1566_v59 = vld [vmem:[#allocation2 + $0x3b0] ss:$8 sps:$4 sm:$0xff]   ;;  %v1571_v60 = vld [vmem:[#allocation2 + $0x1c4] ss:$8 sps:$4 sm:$0xff]  }
  0x5f   :  { %956 = vmatprep.subr.bf16.mxu0 %v1487_v61  ;;  %v1574_v61 = vld [vmem:[#allocation2 + $0x3c4] ss:$8 sps:$4 sm:$0xff]  }
  0x61   :  { %875 = vmatpush1.bf16.msra.mxu1 %v1489_v62  ;;  %v1569_v62 = vld [vmem:[#allocation2 + $0x1c0] ss:$8 sps:$4 sm:$0xff]  }
  0x62   :  { %957 = vmatpush1.bf16.msra.mxu0 %v1490_v63  ;;  %876 = vmatprep.subr.bf16.mxu1 %v1491_v0  ;;  %v1572_v63 = vld [vmem:[#allocation2 + $0x3c0] ss:$8 sps:$4 sm:$0xff]   ;;  %v1577_v0 = vld [vmem:[#allocation2 + $0x1d4] ss:$8 sps:$4 sm:$0xff]  }
  0x63   :  { %958 = vmatprep.subr.bf16.mxu0 %v1493_v1  ;;  %v1580_v1 = vld [vmem:[#allocation2 + $0x3d4] ss:$8 sps:$4 sm:$0xff]  }
  0x65   :  { %877 = vmatpush1.bf16.msra.mxu1 %v1495_v2  ;;  %v1575_v2 = vld [vmem:[#allocation2 + $0x1d0] ss:$8 sps:$4 sm:$0xff]  }
  0x66   :  { %959 = vmatpush1.bf16.msra.mxu0 %v1496_v3  ;;  %887 = vmatprep.subr.bf16.mxu1 %v1499_v4  ;;  %v1578_v3 = vld [vmem:[#allocation2 + $0x3d0] ss:$8 sps:$4 sm:$0xff]   ;;  %v1583_v4 = vld [vmem:[#allocation2 + $0x1e4] ss:$8 sps:$4 sm:$0xff]  }
  0x67   :  { %969 = vmatprep.subr.bf16.mxu0 %v1502_v7  ;;  %v1584_v7 = vld [vmem:[#allocation2 + $0x3e0] ss:$8 sps:$4 sm:$0xff]  }
  0x68   :  { %879 = vmatmul.mubr.bf16.vlgmr.msra.gmra.mrb[0].mxu1 %v58_v10  ;;  %v1587_v10 = vld [vmem:[#allocation2 + $0x1f0] ss:$8 sps:$4 sm:$0xff]  }
  0x69   :  { %961 = vmatmul.mubr.bf16.vlgmr.msra.gmra.mrb[0].mxu0 %v62_v11  ;;  %888 = vmatpush1.bf16.msra.mxu1 %v1497_v8  ;;  %v1589_v8 = vld [vmem:[#allocation2 + $0x1f4] ss:$8 sps:$4 sm:$0xff]   ;;  %v1590_v11 = vld [vmem:[#allocation2 + $0x3f0] ss:$8 sps:$4 sm:$0xff]  }
  0x6a   :  { %970 = vmatpush1.bf16.msra.mxu0 %v1500_v9  ;;  %889 = vmatprep.subr.bf16.mxu1 %v1505_v12  ;;  %v1592_v9 = vld [vmem:[#allocation2 + $0x3f4] ss:$8 sps:$4 sm:$0xff]  }
  0x6b   :  { %971 = vmatprep.subr.bf16.mxu0 %v1508_v13  ;;  %919 = vmatprep.mubr.bf16.mxu1 %v61_v37  ;;  %v52_v12 = vld [vmem:[%s1788_s0 + $0x10] sm:$0xff] }
  0x6c   :  { %1001 = vmatprep.mubr.bf16.mxu0 %v65_v40  ;;  %v56_v13 = vld [vmem:[%s1788_s0 + $0x30] sm:$0xff] }
  0x6d   :  { %890 = vmatpush1.bf16.msra.mxu1 %v1503_v14  ;;  %v1593_v14 = vld [vmem:[#allocation5 + $0x40] sm:$0xff]  }
  0x6e   :  { %972 = vmatpush1.bf16.msra.mxu0 %v1506_v15  ;;  %891 = vmatprep.subr.bf16.mxu1 %v1511_v16  ;;  %v60_v15 = vpack.c.bf16 %v52_v12, %v52_v12  ;;  %v64_v16 = vpack.c.bf16 %v56_v13, %v56_v13 }
  0x6f   :  { %973 = vmatprep.subr.bf16.mxu0 %v1514_v17  ;;  %v1594_v17 = vld [vmem:[#allocation5] sm:$0xff]  }
  0x71   :  { %892 = vmatpush1.bf16.msra.mxu1 %v1509_v18  ;;  %v1595_v18 = vld [vmem:[#allocation5 + $0x48] sm:$0xff]  }
  0x72   :  { %974 = vmatpush1.bf16.msra.mxu0 %v1512_v19  ;;  %893 = vmatprep.subr.bf16.mxu1 %v1517_v20  ;;  %v1596_v19 = vld [vmem:[#allocation5 + $0x8] sm:$0xff]   ;;  %v1597_v20 = vld [vmem:[#allocation5 + $0x50] sm:$0xff]  }
  0x73   :  { %975 = vmatprep.subr.bf16.mxu0 %v1520_v21  ;;  %v1598_v21 = vld [vmem:[#allocation5 + $0x10] sm:$0xff]  }
  0x75   :  { %894 = vmatpush1.bf16.msra.mxu1 %v1515_v22  ;;  %v1599_v22 = vld [vmem:[#allocation5 + $0x58] sm:$0xff]  }
  0x76   :  { %976 = vmatpush1.bf16.msra.mxu0 %v1518_v23  ;;  %895 = vmatprep.subr.bf16.mxu1 %v1523_v24  ;;  %v1600_v23 = vld [vmem:[#allocation5 + $0x18] sm:$0xff]   ;;  %v1601_v24 = vld [vmem:[#allocation5 + $0x60] sm:$0xff]  }
  0x77   :  { %977 = vmatprep.subr.bf16.mxu0 %v1526_v25  ;;  %v1602_v25 = vld [vmem:[#allocation5 + $0x20] sm:$0xff]  }
  0x79   :  { %896 = vmatpush1.bf16.msra.mxu1 %v1521_v26  ;;  %v1603_v26 = vld [vmem:[#allocation5 + $0x68] sm:$0xff]  }
  0x7a   :  { %978 = vmatpush1.bf16.msra.mxu0 %v1524_v27  ;;  %897 = vmatprep.subr.bf16.mxu1 %v1529_v28  ;;  %v1604_v27 = vld [vmem:[#allocation5 + $0x28] sm:$0xff]   ;;  %v1605_v28 = vld [vmem:[#allocation5 + $0x70] sm:$0xff]  }
  0x7b   :  { %979 = vmatprep.subr.bf16.mxu0 %v1532_v29  ;;  %v1606_v29 = vld [vmem:[#allocation5 + $0x30] sm:$0xff]  }
  0x7d   :  { %898 = vmatpush1.bf16.msra.mxu1 %v1527_v30  ;;  %v1607_v30 = vld [vmem:[#allocation5 + $0x78] sm:$0xff]  }
  0x7e   :  { %980 = vmatpush1.bf16.msra.mxu0 %v1530_v31  ;;  %899 = vmatprep.subr.bf16.mxu1 %v1535_v32  ;;  %v1608_v31 = vld [vmem:[#allocation5 + $0x38] sm:$0xff]   ;;  %v196_v32 = vlaneseq }
  0x7f   :  { %981 = vmatprep.subr.bf16.mxu0 %v1538_v33 }
  0x80   :  { %v197_v33 = vshrl.u32 %v196_v32, 7 }
  0x81   :  { %900 = vmatpush1.bf16.msra.mxu1 %v1533_v35  ;;  %v194_v35 = vld [vmem:[%s1790_s2] sm:$0x3] }
  0x82   :  { %982 = vmatpush1.bf16.msra.mxu0 %v1536_v36  ;;  %901 = vmatprep.subr.bf16.mxu1 %v1541_v39  ;;  %v198_v34 = vsub.s32 0, %v197_v33  ;;  %v202_v36 = vsub.s32 1, %v197_v33 }
  0x83   :  { %983 = vmatprep.subr.bf16.mxu0 %v1544_v41 }
  0x84   :  { %v199_v37 = vrot.slane %v194_v35, %v198_v34  ;;  %v203_v38 = vrot.slane %v194_v35, %v202_v36 }
  0x85   :  { %902 = vmatpush1.bf16.msra.mxu1 %v1539_v42 }
  0x86   :  { %984 = vmatpush1.bf16.msra.mxu0 %v1542_v43  ;;  %903 = vmatprep.subr.bf16.mxu1 %v1547_v44 }
  0x87   :  { %985 = vmatprep.subr.bf16.mxu0 %v1550_v45 }
  0x89   :  { %904 = vmatpush1.bf16.msra.mxu1 %v1545_v46 }
  0x8a   :  { %986 = vmatpush1.bf16.msra.mxu0 %v1548_v47  ;;  %905 = vmatprep.subr.bf16.mxu1 %v1553_v48 }
  0x8b   :  { %987 = vmatprep.subr.bf16.mxu0 %v1556_v49 }
  0x8d   :  { %906 = vmatpush1.bf16.msra.mxu1 %v1551_v50 }
  0x8e   :  { %988 = vmatpush1.bf16.msra.mxu0 %v1554_v51  ;;  %907 = vmatprep.subr.bf16.mxu1 %v1559_v52 }
  0x8f   :  { %989 = vmatprep.subr.bf16.mxu0 %v1562_v53 }
  0x91   :  { %908 = vmatpush1.bf16.msra.mxu1 %v1557_v54 }
  0x92   :  { %990 = vmatpush1.bf16.msra.mxu0 %v1560_v55  ;;  %909 = vmatprep.subr.bf16.mxu1 %v1565_v56 }
  0x93   :  { %991 = vmatprep.subr.bf16.mxu0 %v1568_v57  ;;  %v1343_v57 = vld [vmem:[%s1792_s4] ss:$0 sm:$0xff]  ;;  %s1657_s4 = scalar_lea.vmem %s1206_s13, 128 }
  0x94   :  { %p1658_p2 = scmp.ne.s32.totalorder %s1206_s13, %s1657_s4  ;;  %p1663_p4 = scmp.lt.s32.totalorder %s1657_s4, %s1657_s4 }
  0x95   :  { %910 = vmatpush1.bf16.msra.mxu1 %v1563_v58 }
  0x96   :  { %992 = vmatpush1.bf16.msra.mxu0 %v1566_v59  ;;  %911 = vmatprep.subr.bf16.mxu1 %v1571_v60  ;;  %p1664_p5 = por %p1663_p4, %p1662_p3 }
  0x97   :  { %993 = vmatprep.subr.bf16.mxu0 %v1574_v61 }
  0x98   :  { %p1665_p6 = pnand %p1664_p5, %p1658_p2 }
  0x99   :  { %912 = vmatpush1.bf16.msra.mxu1 %v1569_v62 }
  0x9a   :  { %994 = vmatpush1.bf16.msra.mxu0 %v1572_v63  ;;  %913 = vmatprep.subr.bf16.mxu1 %v1577_v0 }
  0x9b   :  { %995 = vmatprep.subr.bf16.mxu0 %v1580_v1 }
  0x9d   :  { %914 = vmatpush1.bf16.msra.mxu1 %v1575_v2 }
  0x9e   :  { %996 = vmatpush1.bf16.msra.mxu0 %v1578_v3  ;;  %915 = vmatprep.subr.bf16.mxu1 %v1583_v4 }
  0x9f   :  { %997 = vmatprep.subr.bf16.mxu0 %v1586_v5 }
  0xa1   :  { %916 = vmatpush1.bf16.msra.mxu1 %v1581_v6 }
  0xa2   :  { %998 = vmatpush1.bf16.msra.mxu0 %v1584_v7  ;;  %917 = vmatprep.subr.bf16.mxu1 %v1589_v8 }
  0xa3   :  { %999 = vmatprep.subr.bf16.mxu0 %v1592_v9 }
  0xa5   :  { %918 = vmatpush1.bf16.msra.mxu1 %v1587_v10 }
  0xa6   :  { %1000 = vmatpush1.bf16.msra.mxu0 %v1590_v11  ;;  %1360 = vmatprep.subr.bf16.mxu1 %v1593_v14 }
  0xa8   :  { %920 = vmatmul.mubr.bf16.vlgmr.msra.gmra.mrb[0].mxu1 %v60_v15 }
  0xa9   :  { %1002 = vmatmul.mubr.bf16.vlgmr.msra.gmra.mrb[0].mxu0 %v64_v16  ;;  %1361 = vmatpush3.bf16.msra.mxu1 %v1594_v17 }
  0xaa   :  { %1362 = vmatprep.subr.bf16.mxu1 %v1595_v18 }
  0xad   :  { %1363 = vmatpush3.bf16.msra.mxu1 %v1596_v19 }
  0xae   :  { %1364 = vmatprep.subr.bf16.mxu1 %v1597_v20 }
  0xb1   :  { %1365 = vmatpush3.bf16.msra.mxu1 %v1598_v21 }
  0xb2   :  { %1366 = vmatprep.subr.bf16.mxu1 %v1599_v22 }
  0xb5   :  { %1367 = vmatpush3.bf16.msra.mxu1 %v1600_v23 }
  0xb6   :  { %1368 = vmatprep.subr.bf16.mxu1 %v1601_v24 }
  0xb9   :  { %1369 = vmatpush3.bf16.msra.mxu1 %v1602_v25 }
  0xba   :  { %1370 = vmatprep.subr.bf16.mxu1 %v1603_v26 }
  0xbd   :  { %1371 = vmatpush3.bf16.msra.mxu1 %v1604_v27 }
  0xbe   :  { %1372 = vmatprep.subr.bf16.mxu1 %v1605_v28 }
  0xc1   :  { %1373 = vmatpush3.bf16.msra.mxu1 %v1606_v29 }
  0xc2   :  { %1374 = vmatprep.subr.bf16.mxu1 %v1607_v30 }
  0xc5   :  { %1375 = vmatpush3.bf16.msra.mxu1 %v1608_v31 }
 0x17b   :  { %v921_v39 = vpop.f32.mrb[0].mxu1 }
 0x17c   :  { %v1003_v40 = vpop.f32.mrb[0].mxu0  ;;  %v1382_v41 = vadd.f32 %v921_v39, %v199_v37  ;;  %v923_v42 = vpop.f32.mrb[1].mxu1 }
 0x17d   :  { %v1005_v43 = vpop.f32.mrb[1].mxu0  ;;  %v1384_v44 = vadd.f32 %v923_v42, %v203_v38  ;;  %v925_v45 = vpop.f32.mrb[2].mxu1 }
 0x17e   :  { %v1007_v46 = vpop.f32.mrb[2].mxu0  ;;  %v1383_v47 = vadd.f32 %v1382_v41, %v1003_v40  ;;  %v926_v48 = vpop.f32.mrb[3].mxu1 }
 0x17f   :  { %v1008_v49 = vpop.f32.mrb[3].mxu0  ;;  %v1385_v50 = vadd.f32 %v1384_v44, %v1005_v43 }
 0x180   :  { %v1010_v51 = vmax.f32 %v1383_v47, 0.0 }
 0x181   :  { %v1011_v52 = vmax.f32 %v1385_v50, 0.0 }
 0x182   :  { %v1012_v54 = vpack.c.bf16 %v1010_v51, %v1010_v51 }
 0x183   :  { %v1013_v53 = vpack.c.bf16 %v1011_v52, %v1011_v52 }
 0x185   :  { %1181 = vmatprep.mubr.bf16.mxu1 %v1013_v53 }
 0x186   :  { %1182 = vmatmul.mubr.bf16.vlgmr.msra.gmra.mrb[4].mxu1 %v1012_v54 }
 0x259   :  { %v1376_v55 = vpop.f32.mrb[4].mxu1 }
 0x25a   :  { %v1377_v56 = vpop.f32.mrb[5].mxu1 }
 0x25b   :  { %v1378_v58 = vadd.f32 %v1377_v56, %v1376_v55  ;;  %v1379_v59 = vpop.f32.mrb[6].mxu1 }
 0x25c   :  { %v1380_v60 = vpop.f32.mrb[7].mxu1 }
 0x25d   :  { %v1184_v61 = vadd.f32 %v1378_v58, %v1343_v57 }
 0x25f   :  { %1189 = vmax.xlane.f32.xlu0 %v1184_v61 }
 0x2ec   :  { %v1190_v62 = vpop.xlane.xlu0 %1189 }
 0x2ed   :  { %v1191_v63 = vsub.f32 %v1184_v61, %v1190_v62 }
 0x2ef   :  { %v1192_v0 = vmul.f32 1.442695, %v1191_v63 }
 0x2f1   :  { %1609 = vpow2.f32 %v1192_v0 }
 0x2fb   :  { %v1610_v1 = vpop.eup %1609 }
 0x2fc   :  { %1194 = vadd.xlane.f32.xlu0 %v1610_v1 }
 0x389   :  { %v1195_v2 = vpop.xlane.xlu0 %1194 }
 0x38a   :  { %1611 = vrcp.f32 %v1195_v2 }
 0x394   :  { %v1612_v3 = vpop.eup %1611 }
 0x395   :  { %v1197_v4 = vmul.f32 %v1612_v3, %v1610_v1 }
 0x397   :  { %1198 = vst [vmem:[#allocation7] sm:$0xff] %v1197_v4 }
 0x398   :  { %1668 = shalt.err (!%p1665_p6)
}
 0x399   :  { %s1669_s16 = scalar_lea.hbm %s1793_s5, 128 }
 0x39a   :  { %p1670_p7 = scmp.ne.s32.totalorder %s1793_s5, %s1669_s16  ;;  %p1673_p8 = scmp.lt.u32.totalorder %s1669_s16, %s1793_s5 }
 0x39c   :  { %p1675_p9 = pnand %p1673_p8, %p1670_p7 }
 0x39e   :  { %1678 = shalt.err (!%p1675_p9)
}
 0x39f   :  { %1208 = dma.vmem_to_hbm [thread:$0]  %s1206_s13, 128, %s1793_s5, [#allocation4]  }
 0x3a0   :  { %1683 = dma.done.wait [#allocation4], 128  }
 0x3a1   :  { %1684 = vsyncadd [#allocation4], 4294967168 }
 0x3a2   :  { %1212 = vsyncpa [#allocation3], 1 }
 0x3a3   :  { %1213 = vsyncpa [#allocation6], 1 }
 0x3a4   :  { %1214 = vsyncpa [#allocation4], 1 }

</bundles_post_ra>
